<compile_context>
chip_gen: v7x
topology: tpu7x:2x2x1
jax: 0.10.0
libtpu: 0.0.40
codegen_flags: <defaults>
</compile_context>

<pallas_src>
import jax
import jax.numpy as jnp
from jax.experimental import pallas as pl
from jax.experimental.pallas import tpu as pltpu


def _matmul_bias_kernel(x_ref, w_ref, b_ref, o_ref):
    # x_ref: (tM, K)   im2col activations
    # w_ref: (K, tN)   folded 3x3 weights (K = 9*Cin)
    # b_ref: (1, tN)   f32 bias
    # o_ref: (tM, tN)
    acc = jnp.dot(x_ref[...], w_ref[...], preferred_element_type=jnp.float32)
    o_ref[...] = (acc + b_ref[...]).astype(o_ref.dtype)


def _round_up(x, m):
    return (x + m - 1) // m * m


def downsample3d_forward(x, weight, bias):
    """x: (B, C, F, H, W); weight: (Cout, Cin, 3, 3); bias: (Cout,) — PyTorch conventions.

    Equivalent to Downsample3D(use_conv=True, padding=1):
    InflatedConv3d(C, Cout, 3, stride=2, padding=1) applied per frame.
    """
    B, C, F, H, W = x.shape
    Cout, Cin, kh, kw = weight.shape
    assert Cin == C and (kh, kw) == (3, 3)
    assert H % 2 == 0 and W % 2 == 0  # TODO(synk): odd H/W not implemented
    Ho, Wo = H // 2, W // 2
    N = B * F
    M = N * Ho * Wo
    K = 9 * C
    dtype = x.dtype
    itm = jnp.dtype(dtype).itemsize

    # --- wrapper-side im2col: one (M, 9*Cin) matrix, channels-last, done with cheap
    #     XLA strided slices on HBM data (no padded full frames ever enter VMEM) ---
    x_nhwc = jnp.transpose(x, (0, 2, 3, 4, 1)).reshape(N, H, W, C)
    xp = jnp.pad(x_nhwc, ((0, 0), (1, 1), (1, 1), (0, 0)))
    patches = [xp[:, dy:dy + H:2, dx:dx + W:2, :]            # (N, Ho, Wo, C) per tap
               for dy in range(3) for dx in range(3)]
    xk = jnp.concatenate(patches, axis=-1).reshape(M, K)     # (M, 9*Cin)

    # --- weights folded to (9*Cin, cout_p); Cout padded to a 128 multiple so the MXU
    #     N dimension and the output stores are lane-dense ---
    cout_p = _round_up(Cout, 128)
    w2 = jnp.transpose(weight, (2, 3, 1, 0)).reshape(K, Cout)         # rows: (dy, dx, ci)
    w2 = jnp.pad(w2, ((0, 0), (0, cout_p - Cout))).astype(dtype)
    b2 = jnp.pad(bias.astype(jnp.float32), (0, cout_p - Cout)).reshape(1, cout_p)

    # --- generation-aware VMEM budgeting ---
    try:
        vmem_cap = int(pltpu.get_tpu_info().vmem_capacity_bytes)
    except Exception:
        vmem_cap = 64 * 1024 * 1024                     # conservative (v7x per-TC)
    block_budget = int(vmem_cap * 0.375)                # ~48 MiB on v5e/v6e, ~24 MiB on v7x
    vmem_limit = int(vmem_cap * 0.75)                   # ~96 MiB on v5e/v6e, ~48 MiB on v7x

    # --- Cout tiling: keep the whole weight matrix resident (constant block index ->
    #     single DMA) when it is small; otherwise tile and rely on a large M block ---
    w_bytes = K * cout_p * itm
    if w_bytes <= 16 * 1024 * 1024:
        tN = cout_p
    elif cout_p % 256 == 0:
        tN = 256      # TODO(synk): prefer 128 on v5e (128-wide MXU, single vst slot)
    else:
        tN = 128

    # --- M tiling from the VMEM budget (double-buffered x & out blocks + f32 temp) ---
    fixed = 2 * K * tN * itm                            # weight block (double-buffered)
    per_row = 2 * K * itm + 2 * tN * itm + tN * 4       # x + out blocks + f32 accumulator
    tM = max(8, (max(block_budget - fixed, 8 * per_row)) // per_row)
    tM = min(tM, _round_up(M, 8))
    tM = max(8, (tM // 8) * 8)                          # sublane-aligned M block

    Mp = _round_up(M, tM)
    if Mp > M:
        xk = jnp.pad(xk, ((0, Mp - M), (0, 0)))

    grid = (Mp // tM, cout_p // tN)

    out = pl.pallas_call(
        _matmul_bias_kernel,
        out_shape=jax.ShapeDtypeStruct((Mp, cout_p), dtype),
        grid=grid,
        in_specs=[
            pl.BlockSpec((tM, K), lambda i, j: (i, 0)),   # activations: not re-fetched across Cout blocks
            pl.BlockSpec((K, tN), lambda i, j: (0, j)),   # weights: constant index when tN == cout_p
            pl.BlockSpec((1, tN), lambda i, j: (0, j)),
        ],
        out_specs=pl.BlockSpec((tM, tN), lambda i, j: (i, j)),
        compiler_params=pltpu.CompilerParams(
            # M axis "parallel" (megacore split lands here on v7x), Cout axis "arbitrary"
            # so the two cores never duplicate the large activation DMAs.
            dimension_semantics=("parallel", "arbitrary"),
            vmem_limit_bytes=vmem_limit),
    )(xk, w2, b2)

    out = out[:M, :Cout].reshape(B, F, Ho, Wo, Cout)
    return jnp.transpose(out, (0, 4, 1, 2, 3))            # (B, Cout, F, Ho, Wo)


def downsample3d_reference(x, weight, bias):
    """Pure-JAX reference matching the PyTorch Downsample3D forward."""
    B, C, F, H, W = x.shape
    x2d = jnp.transpose(x, (0, 2, 1, 3, 4)).reshape(B * F, C, H, W)
    out = jax.lax.conv_general_dilated(
        x2d, weight, window_strides=(2, 2), padding=((1, 1), (1, 1)),
        dimension_numbers=('NCHW', 'OIHW', 'NCHW'))
    out = out + bias[None, :, None, None]
    Ho, Wo = out.shape[-2:]
    out = out.reshape(B, F, -1, Ho, Wo)
    return jnp.transpose(out, (0, 2, 1, 3, 4))


if __name__ == "__main__":
    key = jax.random.PRNGKey(0)
    kx, kw, kb = jax.random.split(key, 3)

    B, C, F, H, W = 2, 4, 8, 16, 16            # (batch, channels, frames, height, width)
    Cout = C                                    # Downsample3D(channels=C, use_conv=True)

    x = jax.random.normal(kx, (B, C, F, H, W), dtype=jnp.float32)
    weight = 0.1 * jax.random.normal(kw, (Cout, C, 3, 3), dtype=jnp.float32)
    bias = 0.05 * jax.random.normal(kb, (Cout,), dtype=jnp.float32)

    out = jax.block_until_ready(downsample3d_forward(x, weight, bias))
    ref = jax.block_until_ready(downsample3d_reference(x, weight, bias))

    assert out.shape == (B, Cout, F, H // 2, W // 2), out.shape
    assert jnp.allclose(out, ref, atol=1e-4, rtol=1e-4), float(jnp.max(jnp.abs(out - ref)))
    print("KERNEL_OK")
</pallas_src>

<mosaic_0001>
module attributes {stable_mosaic.version = 11 : i64} {
  func.func @_matmul_bias_kernel(%arg0: i32, %arg1: i32, %arg2: memref<1024x36xf32, #tpu.memory_space<vmem>>, %arg3: memref<36x128xf32, #tpu.memory_space<vmem>>, %arg4: memref<1x128xf32, #tpu.memory_space<vmem>>, %arg5: memref<1024x128xf32, #tpu.memory_space<vmem>>) attributes {dimension_semantics = [#tpu.dimension_semantics<parallel>, #tpu.dimension_semantics<arbitrary>], iteration_bounds = array<i64: 1, 1>, scalar_prefetch = 0 : i64, scratch_operands = 0 : i64, tpu.core_type = #tpu.core_type<tc>, window_params = [{transform_indices = @transform_0, window_bounds = array<i64: 1024, 36>}, {transform_indices = @transform_1, window_bounds = array<i64: 36, 128>}, {transform_indices = @transform_2, window_bounds = array<i64: 1, 128>}, {transform_indices = @transform_3, window_bounds = array<i64: 1024, 128>}]} {
    %c0 = arith.constant 0 : index
    %c0_0 = arith.constant 0 : index
    %0 = vector.load %arg2[%c0, %c0_0] : memref<1024x36xf32, #tpu.memory_space<vmem>>, vector<1024x36xf32>
    %c0_1 = arith.constant 0 : index
    %c0_2 = arith.constant 0 : index
    %1 = vector.load %arg3[%c0_1, %c0_2] : memref<36x128xf32, #tpu.memory_space<vmem>>, vector<36x128xf32>
    %cst = arith.constant dense<0.000000e+00> : vector<1024x128xf32>
    %2 = tpu.matmul %0, %1, %cst {dimension_numbers = #tpu.dot_dimension_numbers<[1], [0], [0], [1], [0, 0, 1, 1], [], []>} : vector<1024x36xf32>, vector<36x128xf32>, vector<1024x128xf32> -> vector<1024x128xf32>
    %c0_3 = arith.constant 0 : index
    %c0_4 = arith.constant 0 : index
    %3 = vector.load %arg4[%c0_3, %c0_4] : memref<1x128xf32, #tpu.memory_space<vmem>>, vector<1x128xf32>
    %4 = vector.broadcast %3 : vector<1x128xf32> to vector<1024x128xf32>
    %5 = arith.addf %2, %4 : vector<1024x128xf32>
    %c0_5 = arith.constant 0 : index
    %c0_6 = arith.constant 0 : index
    %6 = vector.load %arg5[%c0_5, %c0_6] : memref<1024x128xf32, #tpu.memory_space<vmem>>, vector<1024x128xf32>
    tpu.vector_store %arg5[%c0_5, %c0_6], %5 {strides = array<i32>} : memref<1024x128xf32, #tpu.memory_space<vmem>>, vector<1024x128xf32>,
    return
  }
  func.func @transform_0(%arg0: i32, %arg1: i32) -> (i32, i32) {
    %c0_i32 = arith.constant 0 : i32
    %c0_i32_0 = arith.constant 0 : i32
    return %arg0, %c0_i32 : i32, i32
  }
  func.func @transform_1(%arg0: i32, %arg1: i32) -> (i32, i32) {
    %c0_i32 = arith.constant 0 : i32
    %c0_i32_0 = arith.constant 0 : i32
    return %c0_i32, %arg1 : i32, i32
  }
  func.func @transform_2(%arg0: i32, %arg1: i32) -> (i32, i32) {
    %c0_i32 = arith.constant 0 : i32
    %c0_i32_0 = arith.constant 0 : i32
    return %c0_i32, %arg1 : i32, i32
  }
  func.func @transform_3(%arg0: i32, %arg1: i32) -> (i32, i32) {
    %c0_i32 = arith.constant 0 : i32
    return %arg0, %arg1 : i32, i32
  }
}

</mosaic_0001>

<bundles_post_ra>
// kernel: tpu_custom_call.1
= control target key start
LH: loop header
LB: loop body
LE: loop exit
PB: predicated region body
PF: predicated region fallthrough
CT: control target
= control target key end

     0   :  { %vm155_vm0 = vcmask 293888   ;;  %vm540_vm1 = vcmask 1043456   ;;  %s2594_s0 = inlined_call_operand.vmem [shape: f32[1024,36], index: 0, kind: input, shape index: {}]   ;;  %s2595_s1 = inlined_call_operand.vmem [shape: f32[36,128], index: 1, kind: input, shape index: {}]   ;;  %s2596_s2 = inlined_call_operand.vmem [shape: f32[1,128], index: 2, kind: input, shape index: {}]   ;;  %s2597_s3 = inlined_call_operand.hbm [shape: f32[1024,128], index: 3, kind: output, shape index: {}]  }
   0x1   :  { %v143_v0 = vld [vmem:[%s2595_s1] sm:$0xff]  ;;  %v144_v1 = vld [vmem:[%s2595_s1 + $0x8] sm:$0xff]  ;;  %v145_v2 = vld [vmem:[%s2595_s1 + $0x10] sm:$0xff] }
   0x2   :  { %v1858_v3 = vpack.c.bf16 %v144_v1, %v143_v0  ;;  %v146_v4 = vld [vmem:[%s2595_s1 + $0x18] sm:$0xff]  ;;  %v15_v5 = vld [vmem:[%s2594_s0] sm:$0xff]  ;;  %v16_v9 = vld [vmem:[%s2594_s0 + $0x8] sm:$0xff] }
   0x3   :  { %v1862_v6 = vpack.c.bf16 %v146_v4, %v145_v2  ;;  %1666 = vmatprep.mubr.msk.f32.mxu0 %vm155_vm0, %v15_v5  ;;  %v79_v7 = vld [vmem:[%s2594_s0 + $0x200] sm:$0xff]  ;;  %v80_v10 = vld [vmem:[%s2594_s0 + $0x208] sm:$0xff]  ;;  %v17_v11 = vld [vmem:[%s2594_s0 + $0x10] sm:$0xff] }
   0x4   :  { %1859 = vmatprep.subr.bf16.mxu0 %v1858_v3  ;;  %1866 = vmatprep.subr.bf16.mxu1 %v1858_v3  ;;  %v147_v8 = vld [vmem:[%s2595_s1 + $0x20] sm:$0xf]  ;;  %v81_v12 = vld [vmem:[%s2594_s0 + $0x210] sm:$0xff]  ;;  %v18_v13 = vld [vmem:[%s2594_s0 + $0x18] sm:$0xff] }
   0x5   :  { %1861 = vmatpush3.bf16.msra.mxu0 %v1858_v3  ;;  %1869 = vmatpush3.bf16.msra.mxu1 %v1858_v3  ;;  %v82_v14 = vld [vmem:[%s2594_s0 + $0x218] sm:$0xff]  ;;  %v19_v15 = vld [vmem:[%s2594_s0 + $0x20] sm:$0xff]  ;;  %v20_v17 = vld [vmem:[%s2594_s0 + $0x28] sm:$0xff] }
   0x6   :  { %1863 = vmatprep.subr.bf16.mxu0 %v1862_v6  ;;  %1867 = vmatprep.subr.bf16.mxu1 %v1862_v6  ;;  %v83_v16 = vld [vmem:[%s2594_s0 + $0x220] sm:$0xff]  ;;  %v84_v18 = vld [vmem:[%s2594_s0 + $0x228] sm:$0xff]  ;;  %v21_v19 = vld [vmem:[%s2594_s0 + $0x30] sm:$0xff] }
   0x7   :  { %1762 = vmatprep.mubr.msk.f32.mxu1 %vm155_vm0, %v79_v7  ;;  %v85_v20 = vld [vmem:[%s2594_s0 + $0x230] sm:$0xff]  ;;  %v22_v21 = vld [vmem:[%s2594_s0 + $0x38] sm:$0xff]  ;;  %v23_v23 = vld [vmem:[%s2594_s0 + $0x40] sm:$0xff] }
   0x8   :  { %v86_v22 = vld [vmem:[%s2594_s0 + $0x238] sm:$0xff]  ;;  %v87_v24 = vld [vmem:[%s2594_s0 + $0x240] sm:$0xff]  ;;  %v24_v25 = vld [vmem:[%s2594_s0 + $0x48] sm:$0xff] }
   0x9   :  { %1865 = vmatpush3.bf16.msra.mxu0 %v1862_v6  ;;  %1870 = vmatpush3.bf16.msra.mxu1 %v1862_v6  ;;  %v88_v26 = vld [vmem:[%s2594_s0 + $0x248] sm:$0xff]  ;;  %v25_v27 = vld [vmem:[%s2594_s0 + $0x50] sm:$0xff]  ;;  %v26_v29 = vld [vmem:[%s2594_s0 + $0x58] sm:$0xff] }
   0xa   :  { %1664 = vmatprep.subr.msk.mxu0 %vm540_vm1, %v147_v8  ;;  %1868 = vmatprep.subr.msk.mxu1 %vm540_vm1, %v147_v8  ;;  %v89_v28 = vld [vmem:[%s2594_s0 + $0x250] sm:$0xff]  ;;  %v90_v30 = vld [vmem:[%s2594_s0 + $0x258] sm:$0xff]  ;;  %v27_v31 = vld [vmem:[%s2594_s0 + $0x60] sm:$0xff] }
   0xb   :  { %v91_v32 = vld [vmem:[%s2594_s0 + $0x260] sm:$0xff]  ;;  %v28_v33 = vld [vmem:[%s2594_s0 + $0x68] sm:$0xff]  ;;  %v29_v35 = vld [vmem:[%s2594_s0 + $0x70] sm:$0xff] }
   0xc   :  { %v92_v34 = vld [vmem:[%s2594_s0 + $0x268] sm:$0xff]  ;;  %v93_v36 = vld [vmem:[%s2594_s0 + $0x270] sm:$0xff]  ;;  %v30_v37 = vld [vmem:[%s2594_s0 + $0x78] sm:$0xff] }
   0xd   :  { %1665 = vmatpush3.msk.msra.mxu0 %vm540_vm1, %v147_v8  ;;  %1871 = vmatpush3.msk.msra.mxu1 %vm540_vm1, %v147_v8  ;;  %v94_v38 = vld [vmem:[%s2594_s0 + $0x278] sm:$0xff]  ;;  %v31_v39 = vld [vmem:[%s2594_s0 + $0x80] sm:$0xff]  ;;  %v32_v41 = vld [vmem:[%s2594_s0 + $0x88] sm:$0xff] }
   0xe   :  { %1667 = vmatmul.mubr.msk.f32.vlgmr.msra.gmra.mrb[0].mxu0 %vm155_vm0, %v16_v9  ;;  %1763 = vmatmul.mubr.msk.f32.vlgmr.msra.gmra.mrb[0].mxu1 %vm155_vm0, %v80_v10  ;;  %v95_v40 = vld [vmem:[%s2594_s0 + $0x280] sm:$0xff]  ;;  %v96_v42 = vld [vmem:[%s2594_s0 + $0x288] sm:$0xff]  ;;  %v33_v43 = vld [vmem:[%s2594_s0 + $0x90] sm:$0xff] }
   0xf   :  { %1669 = vmatprep.mubr.msk.f32.mxu0 %vm155_vm0, %v17_v11  ;;  %1765 = vmatprep.mubr.msk.f32.mxu1 %vm155_vm0, %v81_v12  ;;  %v97_v44 = vld [vmem:[%s2594_s0 + $0x290] sm:$0xff] }
  0x12   :  { %1670 = vmatmul.mubr.msk.f32.gmra.mrb[2].mxu0 %vm155_vm0, %v18_v13  ;;  %1766 = vmatmul.mubr.msk.f32.gmra.mrb[2].mxu1 %vm155_vm0, %v82_v14 }
  0x13   :  { %1672 = vmatprep.mubr.msk.f32.mxu0 %vm155_vm0, %v19_v15  ;;  %1768 = vmatprep.mubr.msk.f32.mxu1 %vm155_vm0, %v83_v16 }
  0x16   :  { %1673 = vmatmul.mubr.msk.f32.gmra.mrb[4].mxu0 %vm155_vm0, %v20_v17  ;;  %1769 = vmatmul.mubr.msk.f32.gmra.mrb[4].mxu1 %vm155_vm0, %v84_v18 }
  0x17   :  { %1675 = vmatprep.mubr.msk.f32.mxu0 %vm155_vm0, %v21_v19  ;;  %1771 = vmatprep.mubr.msk.f32.mxu1 %vm155_vm0, %v85_v20 }
  0x1a   :  { %1676 = vmatmul.mubr.msk.f32.gmra.mrb[6].mxu0 %vm155_vm0, %v22_v21  ;;  %1772 = vmatmul.mubr.msk.f32.gmra.mrb[6].mxu1 %vm155_vm0, %v86_v22 }
  0x1b   :  { %1678 = vmatprep.mubr.msk.f32.mxu0 %vm155_vm0, %v23_v23  ;;  %1774 = vmatprep.mubr.msk.f32.mxu1 %vm155_vm0, %v87_v24 }
  0x1e   :  { %1679 = vmatmul.mubr.msk.f32.gmra.mrb[8].mxu0 %vm155_vm0, %v24_v25  ;;  %1775 = vmatmul.mubr.msk.f32.gmra.mrb[8].mxu1 %vm155_vm0, %v88_v26 }
  0x1f   :  { %1681 = vmatprep.mubr.msk.f32.mxu0 %vm155_vm0, %v25_v27  ;;  %1777 = vmatprep.mubr.msk.f32.mxu1 %vm155_vm0, %v89_v28 }
  0x22   :  { %1682 = vmatmul.mubr.msk.f32.gmra.mrb[10].mxu0 %vm155_vm0, %v26_v29  ;;  %1778 = vmatmul.mubr.msk.f32.gmra.mrb[10].mxu1 %vm155_vm0, %v90_v30 }
  0x23   :  { %1684 = vmatprep.mubr.msk.f32.mxu0 %vm155_vm0, %v27_v31  ;;  %1780 = vmatprep.mubr.msk.f32.mxu1 %vm155_vm0, %v91_v32 }
  0x26   :  { %1685 = vmatmul.mubr.msk.f32.gmra.mrb[12].mxu0 %vm155_vm0, %v28_v33  ;;  %1781 = vmatmul.mubr.msk.f32.gmra.mrb[12].mxu1 %vm155_vm0, %v92_v34 }
  0x27   :  { %1687 = vmatprep.mubr.msk.f32.mxu0 %vm155_vm0, %v29_v35  ;;  %1783 = vmatprep.mubr.msk.f32.mxu1 %vm155_vm0, %v93_v36 }
  0x2a   :  { %1688 = vmatmul.mubr.msk.f32.gmra.mrb[14].mxu0 %vm155_vm0, %v30_v37  ;;  %1784 = vmatmul.mubr.msk.f32.gmra.mrb[14].mxu1 %vm155_vm0, %v94_v38 }
  0x2b   :  { %1690 = vmatprep.mubr.msk.f32.mxu0 %vm155_vm0, %v31_v39  ;;  %1786 = vmatprep.mubr.msk.f32.mxu1 %vm155_vm0, %v95_v40 }
  0x2c   :  { %8 = vsyncpa [#allocation3], 0  ;;  %v34_v45 = vld [vmem:[%s2594_s0 + $0x98] sm:$0xff]  ;;  %v35_v47 = vld [vmem:[%s2594_s0 + $0xa0] sm:$0xff] }
  0x2d   :  { %v98_v46 = vld [vmem:[%s2594_s0 + $0x298] sm:$0xff]  ;;  %v99_v48 = vld [vmem:[%s2594_s0 + $0x2a0] sm:$0xff]  ;;  %v36_v49 = vld [vmem:[%s2594_s0 + $0xa8] sm:$0xff] }
  0x2e   :  { %1691 = vmatmul.mubr.msk.f32.gmra.mrb[16].mxu0 %vm155_vm0, %v32_v41  ;;  %1787 = vmatmul.mubr.msk.f32.gmra.mrb[16].mxu1 %vm155_vm0, %v96_v42  ;;  %v100_v50 = vld [vmem:[%s2594_s0 + $0x2a8] sm:$0xff]  ;;  %v37_v51 = vld [vmem:[%s2594_s0 + $0xb0] sm:$0xff]  ;;  %v38_v53 = vld [vmem:[%s2594_s0 + $0xb8] sm:$0xff] }
  0x2f   :  { %1693 = vmatprep.mubr.msk.f32.mxu0 %vm155_vm0, %v33_v43  ;;  %1789 = vmatprep.mubr.msk.f32.mxu1 %vm155_vm0, %v97_v44  ;;  %v101_v52 = vld [vmem:[%s2594_s0 + $0x2b0] sm:$0xff]  ;;  %v102_v54 = vld [vmem:[%s2594_s0 + $0x2b8] sm:$0xff]  ;;  %v39_v55 = vld [vmem:[%s2594_s0 + $0xc0] sm:$0xff] }
  0x30   :  { %v103_v56 = vld [vmem:[%s2594_s0 + $0x2c0] sm:$0xff]  ;;  %v40_v57 = vld [vmem:[%s2594_s0 + $0xc8] sm:$0xff]  ;;  %v41_v59 = vld [vmem:[%s2594_s0 + $0xd0] sm:$0xff] }
  0x31   :  { %v104_v58 = vld [vmem:[%s2594_s0 + $0x2c8] sm:$0xff]  ;;  %v105_v60 = vld [vmem:[%s2594_s0 + $0x2d0] sm:$0xff]  ;;  %v42_v61 = vld [vmem:[%s2594_s0 + $0xd8] sm:$0xff] }
  0x32   :  { %1694 = vmatmul.mubr.msk.f32.gmra.mrb[18].mxu0 %vm155_vm0, %v34_v45  ;;  %1790 = vmatmul.mubr.msk.f32.gmra.mrb[18].mxu1 %vm155_vm0, %v98_v46  ;;  %v106_v62 = vld [vmem:[%s2594_s0 + $0x2d8] sm:$0xff]  ;;  %v43_v63 = vld [vmem:[%s2594_s0 + $0xe0] sm:$0xff]  ;;  %v44_v1 = vld [vmem:[%s2594_s0 + $0xe8] sm:$0xff] }
  0x33   :  { %1696 = vmatprep.mubr.msk.f32.mxu0 %vm155_vm0, %v35_v47  ;;  %1792 = vmatprep.mubr.msk.f32.mxu1 %vm155_vm0, %v99_v48  ;;  %v107_v0 = vld [vmem:[%s2594_s0 + $0x2e0] sm:$0xff]  ;;  %v108_v2 = vld [vmem:[%s2594_s0 + $0x2e8] sm:$0xff]  ;;  %v45_v3 = vld [vmem:[%s2594_s0 + $0xf0] sm:$0xff] }
  0x34   :  { %v109_v4 = vld [vmem:[%s2594_s0 + $0x2f0] sm:$0xff]  ;;  %v46_v5 = vld [vmem:[%s2594_s0 + $0xf8] sm:$0xff]  ;;  %v47_v7 = vld [vmem:[%s2594_s0 + $0x100] sm:$0xff] }
  0x35   :  { %v110_v6 = vld [vmem:[%s2594_s0 + $0x2f8] sm:$0xff]  ;;  %v111_v8 = vld [vmem:[%s2594_s0 + $0x300] sm:$0xff]  ;;  %v48_v9 = vld [vmem:[%s2594_s0 + $0x108] sm:$0xff] }
  0x36   :  { %1697 = vmatmul.mubr.msk.f32.gmra.mrb[20].mxu0 %vm155_vm0, %v36_v49  ;;  %1793 = vmatmul.mubr.msk.f32.gmra.mrb[20].mxu1 %vm155_vm0, %v100_v50  ;;  %v112_v10 = vld [vmem:[%s2594_s0 + $0x308] sm:$0xff]  ;;  %v49_v11 = vld [vmem:[%s2594_s0 + $0x110] sm:$0xff]  ;;  %v50_v13 = vld [vmem:[%s2594_s0 + $0x118] sm:$0xff] }
  0x37   :  { %1699 = vmatprep.mubr.msk.f32.mxu0 %vm155_vm0, %v37_v51  ;;  %1795 = vmatprep.mubr.msk.f32.mxu1 %vm155_vm0, %v101_v52  ;;  %v113_v12 = vld [vmem:[%s2594_s0 + $0x310] sm:$0xff]  ;;  %v114_v14 = vld [vmem:[%s2594_s0 + $0x318] sm:$0xff]  ;;  %v51_v15 = vld [vmem:[%s2594_s0 + $0x120] sm:$0xff] }
  0x38   :  { %v115_v16 = vld [vmem:[%s2594_s0 + $0x320] sm:$0xff]  ;;  %v52_v17 = vld [vmem:[%s2594_s0 + $0x128] sm:$0xff]  ;;  %v53_v19 = vld [vmem:[%s2594_s0 + $0x130] sm:$0xff] }
  0x39   :  { %v116_v18 = vld [vmem:[%s2594_s0 + $0x328] sm:$0xff]  ;;  %v117_v20 = vld [vmem:[%s2594_s0 + $0x330] sm:$0xff]  ;;  %v54_v21 = vld [vmem:[%s2594_s0 + $0x138] sm:$0xff] }
  0x3a   :  { %1700 = vmatmul.mubr.msk.f32.gmra.mrb[22].mxu0 %vm155_vm0, %v38_v53  ;;  %1796 = vmatmul.mubr.msk.f32.gmra.mrb[22].mxu1 %vm155_vm0, %v102_v54  ;;  %v118_v22 = vld [vmem:[%s2594_s0 + $0x338] sm:$0xff]  ;;  %v55_v23 = vld [vmem:[%s2594_s0 + $0x140] sm:$0xff]  ;;  %v56_v25 = vld [vmem:[%s2594_s0 + $0x148] sm:$0xff] }
  0x3b   :  { %1702 = vmatprep.mubr.msk.f32.mxu0 %vm155_vm0, %v39_v55  ;;  %1798 = vmatprep.mubr.msk.f32.mxu1 %vm155_vm0, %v103_v56  ;;  %v119_v24 = vld [vmem:[%s2594_s0 + $0x340] sm:$0xff]  ;;  %v120_v26 = vld [vmem:[%s2594_s0 + $0x348] sm:$0xff]  ;;  %v57_v27 = vld [vmem:[%s2594_s0 + $0x150] sm:$0xff] }
  0x3c   :  { %v121_v28 = vld [vmem:[%s2594_s0 + $0x350] sm:$0xff]  ;;  %v58_v29 = vld [vmem:[%s2594_s0 + $0x158] sm:$0xff]  ;;  %v59_v31 = vld [vmem:[%s2594_s0 + $0x160] sm:$0xff] }
  0x3d   :  { %v122_v30 = vld [vmem:[%s2594_s0 + $0x358] sm:$0xff]  ;;  %v123_v32 = vld [vmem:[%s2594_s0 + $0x360] sm:$0xff]  ;;  %v60_v33 = vld [vmem:[%s2594_s0 + $0x168] sm:$0xff] }
  0x3e   :  { %1703 = vmatmul.mubr.msk.f32.gmra.mrb[24].mxu0 %vm155_vm0, %v40_v57  ;;  %1799 = vmatmul.mubr.msk.f32.gmra.mrb[24].mxu1 %vm155_vm0, %v104_v58  ;;  %v124_v34 = vld [vmem:[%s2594_s0 + $0x368] sm:$0xff]  ;;  %v61_v35 = vld [vmem:[%s2594_s0 + $0x170] sm:$0xff]  ;;  %v62_v37 = vld [vmem:[%s2594_s0 + $0x178] sm:$0xff] }
  0x3f   :  { %1705 = vmatprep.mubr.msk.f32.mxu0 %vm155_vm0, %v41_v59  ;;  %1801 = vmatprep.mubr.msk.f32.mxu1 %vm155_vm0, %v105_v60  ;;  %v125_v36 = vld [vmem:[%s2594_s0 + $0x370] sm:$0xff]  ;;  %v126_v38 = vld [vmem:[%s2594_s0 + $0x378] sm:$0xff]  ;;  %v63_v39 = vld [vmem:[%s2594_s0 + $0x180] sm:$0xff] }
  0x40   :  { %v127_v40 = vld [vmem:[%s2594_s0 + $0x380] sm:$0xff]  ;;  %v64_v41 = vld [vmem:[%s2594_s0 + $0x188] sm:$0xff]  ;;  %v65_v43 = vld [vmem:[%s2594_s0 + $0x190] sm:$0xff] }
  0x41   :  { %v128_v42 = vld [vmem:[%s2594_s0 + $0x388] sm:$0xff]  ;;  %v129_v44 = vld [vmem:[%s2594_s0 + $0x390] sm:$0xff]  ;;  %v66_v45 = vld [vmem:[%s2594_s0 + $0x198] sm:$0xff] }
  0x42   :  { %1706 = vmatmul.mubr.msk.f32.gmra.mrb[26].mxu0 %vm155_vm0, %v42_v61  ;;  %1802 = vmatmul.mubr.msk.f32.gmra.mrb[26].mxu1 %vm155_vm0, %v106_v62  ;;  %v130_v46 = vld [vmem:[%s2594_s0 + $0x398] sm:$0xff]  ;;  %v67_v47 = vld [vmem:[%s2594_s0 + $0x1a0] sm:$0xff]  ;;  %v68_v49 = vld [vmem:[%s2594_s0 + $0x1a8] sm:$0xff] }
  0x43   :  { %1708 = vmatprep.mubr.msk.f32.mxu0 %vm155_vm0, %v43_v63  ;;  %1804 = vmatprep.mubr.msk.f32.mxu1 %vm155_vm0, %v107_v0  ;;  %v131_v48 = vld [vmem:[%s2594_s0 + $0x3a0] sm:$0xff]  ;;  %v132_v50 = vld [vmem:[%s2594_s0 + $0x3a8] sm:$0xff]  ;;  %v69_v51 = vld [vmem:[%s2594_s0 + $0x1b0] sm:$0xff] }
  0x44   :  { %v133_v52 = vld [vmem:[%s2594_s0 + $0x3b0] sm:$0xff]  ;;  %v70_v53 = vld [vmem:[%s2594_s0 + $0x1b8] sm:$0xff]  ;;  %v71_v55 = vld [vmem:[%s2594_s0 + $0x1c0] sm:$0xff] }
  0x45   :  { %v134_v54 = vld [vmem:[%s2594_s0 + $0x3b8] sm:$0xff]  ;;  %v135_v56 = vld [vmem:[%s2594_s0 + $0x3c0] sm:$0xff]  ;;  %v72_v57 = vld [vmem:[%s2594_s0 + $0x1c8] sm:$0xff] }
  0x46   :  { %1709 = vmatmul.mubr.msk.f32.gmra.mrb[28].mxu0 %vm155_vm0, %v44_v1  ;;  %1805 = vmatmul.mubr.msk.f32.gmra.mrb[28].mxu1 %vm155_vm0, %v108_v2  ;;  %v136_v58 = vld [vmem:[%s2594_s0 + $0x3c8] sm:$0xff]  ;;  %v73_v59 = vld [vmem:[%s2594_s0 + $0x1d0] sm:$0xff]  ;;  %v74_v61 = vld [vmem:[%s2594_s0 + $0x1d8] sm:$0xff] }
  0x47   :  { %1711 = vmatprep.mubr.msk.f32.mxu0 %vm155_vm0, %v45_v3  ;;  %1807 = vmatprep.mubr.msk.f32.mxu1 %vm155_vm0, %v109_v4  ;;  %v137_v60 = vld [vmem:[%s2594_s0 + $0x3d0] sm:$0xff]  ;;  %v138_v62 = vld [vmem:[%s2594_s0 + $0x3d8] sm:$0xff]  ;;  %v75_v63 = vld [vmem:[%s2594_s0 + $0x1e0] sm:$0xff] }
  0x48   :  { %v139_v0 = vld [vmem:[%s2594_s0 + $0x3e0] sm:$0xff]  ;;  %v76_v1 = vld [vmem:[%s2594_s0 + $0x1e8] sm:$0xff]  ;;  %v77_v3 = vld [vmem:[%s2594_s0 + $0x1f0] sm:$0xff] }
  0x49   :  { %v140_v2 = vld [vmem:[%s2594_s0 + $0x3e8] sm:$0xff]  ;;  %v141_v4 = vld [vmem:[%s2594_s0 + $0x3f0] sm:$0xff] }
  0x4a   :  { %1712 = vmatmul.mubr.msk.f32.gmra.mrb[30].mxu0 %vm155_vm0, %v46_v5  ;;  %1808 = vmatmul.mubr.msk.f32.gmra.mrb[30].mxu1 %vm155_vm0, %v110_v6  ;;  %v78_v5 = vld [vmem:[%s2594_s0 + $0x1f8] sm:$0xff] }
  0x4b   :  { %1714 = vmatprep.mubr.msk.f32.mxu0 %vm155_vm0, %v47_v7  ;;  %1810 = vmatprep.mubr.msk.f32.mxu1 %vm155_vm0, %v111_v8  ;;  %v142_v6 = vld [vmem:[%s2594_s0 + $0x3f8] sm:$0xff]  ;;  %v2452_v7 = vld [vmem:[%s2596_s2] ss:$0 sm:$0xff]  ;;  %s1899_s0 = smov [#allocation2]  }
  0x4c   :  { %s1382_s2 = sshll.u32 %s1899_s0, 4  ;;  %s1383_s2 = int_to_ptr.vmem [resolvable:$true] %s1382_s2 }
  0x4d   :  { %s1875_s28 = scalar_lea.vmem %s1383_s2, 16384  ;;  %p1880_p1 = scmp.lt.s32.totalorder %s1383_s2, %s1383_s2 }
  0x4e   :  { %1715 = vmatmul.mubr.msk.f32.gmra.mrb[32].mxu0 %vm155_vm0, %v48_v9  ;;  %1811 = vmatmul.mubr.msk.f32.gmra.mrb[32].mxu1 %vm155_vm0, %v112_v10  ;;  %p1876_p0 = scmp.ne.s32.totalorder %s1383_s2, %s1875_s28  ;;  %p1881_p2 = scmp.lt.s32.totalorder %s1875_s28, %s1875_s28 }
  0x4f   :  { %1717 = vmatprep.mubr.msk.f32.mxu0 %vm155_vm0, %v49_v11  ;;  %1813 = vmatprep.mubr.msk.f32.mxu1 %vm155_vm0, %v113_v12 }
  0x50   :  { %p1882_p3 = por %p1881_p2, %p1880_p1 }
  0x52   :  { %1718 = vmatmul.mubr.msk.f32.gmra.mrb[34].mxu0 %vm155_vm0, %v50_v13  ;;  %1814 = vmatmul.mubr.msk.f32.gmra.mrb[34].mxu1 %vm155_vm0, %v114_v14  ;;  %p1883_p4 = pnand %p1882_p3, %p1876_p0 }
  0x53   :  { %1720 = vmatprep.mubr.msk.f32.mxu0 %vm155_vm0, %v51_v15  ;;  %1816 = vmatprep.mubr.msk.f32.mxu1 %vm155_vm0, %v115_v16 }
  0x56   :  { %1721 = vmatmul.mubr.msk.f32.gmra.mrb[36].mxu0 %vm155_vm0, %v52_v17  ;;  %1817 = vmatmul.mubr.msk.f32.gmra.mrb[36].mxu1 %vm155_vm0, %v116_v18 }
  0x57   :  { %1723 = vmatprep.mubr.msk.f32.mxu0 %vm155_vm0, %v53_v19  ;;  %1819 = vmatprep.mubr.msk.f32.mxu1 %vm155_vm0, %v117_v20 }
  0x5a   :  { %1724 = vmatmul.mubr.msk.f32.gmra.mrb[38].mxu0 %vm155_vm0, %v54_v21  ;;  %1820 = vmatmul.mubr.msk.f32.gmra.mrb[38].mxu1 %vm155_vm0, %v118_v22 }
  0x5b   :  { %1726 = vmatprep.mubr.msk.f32.mxu0 %vm155_vm0, %v55_v23  ;;  %1822 = vmatprep.mubr.msk.f32.mxu1 %vm155_vm0, %v119_v24 }
  0x5e   :  { %1727 = vmatmul.mubr.msk.f32.gmra.mrb[40].mxu0 %vm155_vm0, %v56_v25  ;;  %1823 = vmatmul.mubr.msk.f32.gmra.mrb[40].mxu1 %vm155_vm0, %v120_v26 }
  0x5f   :  { %1729 = vmatprep.mubr.msk.f32.mxu0 %vm155_vm0, %v57_v27  ;;  %1825 = vmatprep.mubr.msk.f32.mxu1 %vm155_vm0, %v121_v28 }
  0x62   :  { %1730 = vmatmul.mubr.msk.f32.gmra.mrb[42].mxu0 %vm155_vm0, %v58_v29  ;;  %1826 = vmatmul.mubr.msk.f32.gmra.mrb[42].mxu1 %vm155_vm0, %v122_v30 }
  0x63   :  { %1732 = vmatprep.mubr.msk.f32.mxu0 %vm155_vm0, %v59_v31  ;;  %1828 = vmatprep.mubr.msk.f32.mxu1 %vm155_vm0, %v123_v32 }
  0x66   :  { %1733 = vmatmul.mubr.msk.f32.gmra.mrb[44].mxu0 %vm155_vm0, %v60_v33  ;;  %1829 = vmatmul.mubr.msk.f32.gmra.mrb[44].mxu1 %vm155_vm0, %v124_v34 }
  0x67   :  { %1735 = vmatprep.mubr.msk.f32.mxu0 %vm155_vm0, %v61_v35  ;;  %1831 = vmatprep.mubr.msk.f32.mxu1 %vm155_vm0, %v125_v36 }
  0x6a   :  { %1736 = vmatmul.mubr.msk.f32.gmra.mrb[46].mxu0 %vm155_vm0, %v62_v37  ;;  %1832 = vmatmul.mubr.msk.f32.gmra.mrb[46].mxu1 %vm155_vm0, %v126_v38 }
  0x6b   :  { %1738 = vmatprep.mubr.msk.f32.mxu0 %vm155_vm0, %v63_v39  ;;  %1834 = vmatprep.mubr.msk.f32.mxu1 %vm155_vm0, %v127_v40 }
  0x6e   :  { %1739 = vmatmul.mubr.msk.f32.gmra.mrb[48].mxu0 %vm155_vm0, %v64_v41  ;;  %1835 = vmatmul.mubr.msk.f32.gmra.mrb[48].mxu1 %vm155_vm0, %v128_v42 }
  0x6f   :  { %1741 = vmatprep.mubr.msk.f32.mxu0 %vm155_vm0, %v65_v43  ;;  %1837 = vmatprep.mubr.msk.f32.mxu1 %vm155_vm0, %v129_v44 }
  0x72   :  { %1742 = vmatmul.mubr.msk.f32.gmra.mrb[50].mxu0 %vm155_vm0, %v66_v45  ;;  %1838 = vmatmul.mubr.msk.f32.gmra.mrb[50].mxu1 %vm155_vm0, %v130_v46 }
  0x73   :  { %1744 = vmatprep.mubr.msk.f32.mxu0 %vm155_vm0, %v67_v47  ;;  %1840 = vmatprep.mubr.msk.f32.mxu1 %vm155_vm0, %v131_v48 }
  0x76   :  { %1745 = vmatmul.mubr.msk.f32.gmra.mrb[52].mxu0 %vm155_vm0, %v68_v49  ;;  %1841 = vmatmul.mubr.msk.f32.gmra.mrb[52].mxu1 %vm155_vm0, %v132_v50 }
  0x77   :  { %1747 = vmatprep.mubr.msk.f32.mxu0 %vm155_vm0, %v69_v51  ;;  %1843 = vmatprep.mubr.msk.f32.mxu1 %vm155_vm0, %v133_v52 }
  0x7a   :  { %1748 = vmatmul.mubr.msk.f32.gmra.mrb[54].mxu0 %vm155_vm0, %v70_v53  ;;  %1844 = vmatmul.mubr.msk.f32.gmra.mrb[54].mxu1 %vm155_vm0, %v134_v54 }
  0x7b   :  { %1750 = vmatprep.mubr.msk.f32.mxu0 %vm155_vm0, %v71_v55  ;;  %1846 = vmatprep.mubr.msk.f32.mxu1 %vm155_vm0, %v135_v56 }
  0x7e   :  { %1751 = vmatmul.mubr.msk.f32.gmra.mrb[56].mxu0 %vm155_vm0, %v72_v57  ;;  %1847 = vmatmul.mubr.msk.f32.gmra.mrb[56].mxu1 %vm155_vm0, %v136_v58 }
  0x7f   :  { %1753 = vmatprep.mubr.msk.f32.mxu0 %vm155_vm0, %v73_v59  ;;  %1849 = vmatprep.mubr.msk.f32.mxu1 %vm155_vm0, %v137_v60 }
  0x82   :  { %1754 = vmatmul.mubr.msk.f32.gmra.mrb[58].mxu0 %vm155_vm0, %v74_v61  ;;  %1850 = vmatmul.mubr.msk.f32.gmra.mrb[58].mxu1 %vm155_vm0, %v138_v62 }
  0x83   :  { %1756 = vmatprep.mubr.msk.f32.mxu0 %vm155_vm0, %v75_v63  ;;  %1852 = vmatprep.mubr.msk.f32.mxu1 %vm155_vm0, %v139_v0 }
  0x86   :  { %1757 = vmatmul.mubr.msk.f32.gmra.mrb[60].mxu0 %vm155_vm0, %v76_v1  ;;  %1853 = vmatmul.mubr.msk.f32.gmra.mrb[60].mxu1 %vm155_vm0, %v140_v2 }
  0x87   :  { %1759 = vmatprep.mubr.msk.f32.mxu0 %vm155_vm0, %v77_v3  ;;  %1855 = vmatprep.mubr.msk.f32.mxu1 %vm155_vm0, %v141_v4 }
  0x8a   :  { %1760 = vmatmul.mubr.msk.f32.gmra.mrb[62].mxu0 %vm155_vm0, %v78_v5  ;;  %1856 = vmatmul.mubr.msk.f32.gmra.mrb[62].mxu1 %vm155_vm0, %v142_v6 }
  0xe1   :  { %v1668_v8 = vpop.f32.mrb[0].mxu0  ;;  %v1764_v9 = vpop.f32.mrb[0].mxu1 }
  0xe2   :  { %v616_v10 = vadd.f32 %v1668_v8, %v2452_v7  ;;  %v936_v11 = vadd.f32 %v1764_v9, %v2452_v7  ;;  %v610_v12 = vpop.f32.mrb[1].mxu0  ;;  %v930_v13 = vpop.f32.mrb[1].mxu1 }
  0xe3   :  { %v611_v14 = vadd.f32 %v2452_v7, %v610_v12  ;;  %v931_v15 = vadd.f32 %v2452_v7, %v930_v13 }
  0xe4   :  { %1250 = vst [vmem:[#allocation2 + $0x8] sm:$0xff] %v616_v10  ;;  %1314 = vst [vmem:[#allocation2 + $0x208] sm:$0xff] %v936_v11 }
  0xe5   :  { %1249 = vst [vmem:[#allocation2] sm:$0xff] %v611_v14  ;;  %1313 = vst [vmem:[#allocation2 + $0x200] sm:$0xff] %v931_v15  ;;  %v1671_v16 = vpop.f32.mrb[2].mxu0  ;;  %v1767_v17 = vpop.f32.mrb[2].mxu1 }
  0xe6   :  { %v626_v18 = vadd.f32 %v1671_v16, %v2452_v7  ;;  %v946_v19 = vadd.f32 %v1767_v17, %v2452_v7  ;;  %v620_v20 = vpop.f32.mrb[3].mxu0  ;;  %v940_v21 = vpop.f32.mrb[3].mxu1 }
  0xe7   :  { %v621_v22 = vadd.f32 %v2452_v7, %v620_v20  ;;  %v941_v23 = vadd.f32 %v2452_v7, %v940_v21 }
  0xe8   :  { %1252 = vst [vmem:[#allocation2 + $0x18] sm:$0xff] %v626_v18  ;;  %1316 = vst [vmem:[#allocation2 + $0x218] sm:$0xff] %v946_v19 }
  0xe9   :  { %1251 = vst [vmem:[#allocation2 + $0x10] sm:$0xff] %v621_v22  ;;  %1315 = vst [vmem:[#allocation2 + $0x210] sm:$0xff] %v941_v23  ;;  %v1674_v24 = vpop.f32.mrb[4].mxu0  ;;  %v1770_v25 = vpop.f32.mrb[4].mxu1 }
  0xea   :  { %v636_v26 = vadd.f32 %v1674_v24, %v2452_v7  ;;  %v956_v27 = vadd.f32 %v1770_v25, %v2452_v7  ;;  %v630_v28 = vpop.f32.mrb[5].mxu0  ;;  %v950_v29 = vpop.f32.mrb[5].mxu1 }
  0xeb   :  { %v631_v30 = vadd.f32 %v2452_v7, %v630_v28  ;;  %v951_v31 = vadd.f32 %v2452_v7, %v950_v29 }
  0xec   :  { %1254 = vst [vmem:[#allocation2 + $0x28] sm:$0xff] %v636_v26  ;;  %1318 = vst [vmem:[#allocation2 + $0x228] sm:$0xff] %v956_v27 }
  0xed   :  { %1253 = vst [vmem:[#allocation2 + $0x20] sm:$0xff] %v631_v30  ;;  %1317 = vst [vmem:[#allocation2 + $0x220] sm:$0xff] %v951_v31  ;;  %v1677_v32 = vpop.f32.mrb[6].mxu0  ;;  %v1773_v33 = vpop.f32.mrb[6].mxu1 }
  0xee   :  { %v646_v34 = vadd.f32 %v1677_v32, %v2452_v7  ;;  %v966_v35 = vadd.f32 %v1773_v33, %v2452_v7  ;;  %v640_v36 = vpop.f32.mrb[7].mxu0  ;;  %v960_v37 = vpop.f32.mrb[7].mxu1 }
  0xef   :  { %v641_v38 = vadd.f32 %v2452_v7, %v640_v36  ;;  %v961_v39 = vadd.f32 %v2452_v7, %v960_v37 }
  0xf0   :  { %1256 = vst [vmem:[#allocation2 + $0x38] sm:$0xff] %v646_v34  ;;  %1320 = vst [vmem:[#allocation2 + $0x238] sm:$0xff] %v966_v35 }
  0xf1   :  { %1255 = vst [vmem:[#allocation2 + $0x30] sm:$0xff] %v641_v38  ;;  %1319 = vst [vmem:[#allocation2 + $0x230] sm:$0xff] %v961_v39  ;;  %v1680_v40 = vpop.f32.mrb[8].mxu0  ;;  %v1776_v41 = vpop.f32.mrb[8].mxu1 }
  0xf2   :  { %v656_v42 = vadd.f32 %v1680_v40, %v2452_v7  ;;  %v976_v43 = vadd.f32 %v1776_v41, %v2452_v7  ;;  %v650_v44 = vpop.f32.mrb[9].mxu0  ;;  %v970_v45 = vpop.f32.mrb[9].mxu1 }
  0xf3   :  { %v651_v46 = vadd.f32 %v2452_v7, %v650_v44  ;;  %v971_v47 = vadd.f32 %v2452_v7, %v970_v45 }
  0xf4   :  { %1258 = vst [vmem:[#allocation2 + $0x48] sm:$0xff] %v656_v42  ;;  %1322 = vst [vmem:[#allocation2 + $0x248] sm:$0xff] %v976_v43 }
  0xf5   :  { %1257 = vst [vmem:[#allocation2 + $0x40] sm:$0xff] %v651_v46  ;;  %1321 = vst [vmem:[#allocation2 + $0x240] sm:$0xff] %v971_v47  ;;  %v1683_v48 = vpop.f32.mrb[10].mxu0  ;;  %v1779_v49 = vpop.f32.mrb[10].mxu1 }
  0xf6   :  { %v666_v50 = vadd.f32 %v1683_v48, %v2452_v7  ;;  %v986_v51 = vadd.f32 %v1779_v49, %v2452_v7  ;;  %v660_v52 = vpop.f32.mrb[11].mxu0  ;;  %v980_v53 = vpop.f32.mrb[11].mxu1 }
  0xf7   :  { %v661_v54 = vadd.f32 %v2452_v7, %v660_v52  ;;  %v981_v55 = vadd.f32 %v2452_v7, %v980_v53 }
  0xf8   :  { %1260 = vst [vmem:[#allocation2 + $0x58] sm:$0xff] %v666_v50  ;;  %1324 = vst [vmem:[#allocation2 + $0x258] sm:$0xff] %v986_v51 }
  0xf9   :  { %1259 = vst [vmem:[#allocation2 + $0x50] sm:$0xff] %v661_v54  ;;  %1323 = vst [vmem:[#allocation2 + $0x250] sm:$0xff] %v981_v55  ;;  %v1686_v56 = vpop.f32.mrb[12].mxu0  ;;  %v1782_v57 = vpop.f32.mrb[12].mxu1 }
  0xfa   :  { %v676_v58 = vadd.f32 %v1686_v56, %v2452_v7  ;;  %v996_v59 = vadd.f32 %v1782_v57, %v2452_v7  ;;  %v670_v60 = vpop.f32.mrb[13].mxu0  ;;  %v990_v61 = vpop.f32.mrb[13].mxu1 }
  0xfb   :  { %v671_v62 = vadd.f32 %v2452_v7, %v670_v60  ;;  %v991_v63 = vadd.f32 %v2452_v7, %v990_v61 }
  0xfc   :  { %1262 = vst [vmem:[#allocation2 + $0x68] sm:$0xff] %v676_v58  ;;  %1326 = vst [vmem:[#allocation2 + $0x268] sm:$0xff] %v996_v59 }
  0xfd   :  { %1261 = vst [vmem:[#allocation2 + $0x60] sm:$0xff] %v671_v62  ;;  %1325 = vst [vmem:[#allocation2 + $0x260] sm:$0xff] %v991_v63  ;;  %v1689_v0 = vpop.f32.mrb[14].mxu0  ;;  %v1785_v1 = vpop.f32.mrb[14].mxu1 }
  0xfe   :  { %v686_v2 = vadd.f32 %v1689_v0, %v2452_v7  ;;  %v1006_v3 = vadd.f32 %v1785_v1, %v2452_v7  ;;  %v680_v4 = vpop.f32.mrb[15].mxu0  ;;  %v1000_v5 = vpop.f32.mrb[15].mxu1 }
  0xff   :  { %v681_v6 = vadd.f32 %v2452_v7, %v680_v4  ;;  %v1001_v8 = vadd.f32 %v2452_v7, %v1000_v5 }
 0x100   :  { %1264 = vst [vmem:[#allocation2 + $0x78] sm:$0xff] %v686_v2  ;;  %1328 = vst [vmem:[#allocation2 + $0x278] sm:$0xff] %v1006_v3 }
 0x101   :  { %1263 = vst [vmem:[#allocation2 + $0x70] sm:$0xff] %v681_v6  ;;  %1327 = vst [vmem:[#allocation2 + $0x270] sm:$0xff] %v1001_v8  ;;  %v1692_v9 = vpop.f32.mrb[16].mxu0  ;;  %v1788_v10 = vpop.f32.mrb[16].mxu1 }
 0x102   :  { %v696_v11 = vadd.f32 %v1692_v9, %v2452_v7  ;;  %v1016_v12 = vadd.f32 %v1788_v10, %v2452_v7  ;;  %v690_v13 = vpop.f32.mrb[17].mxu0  ;;  %v1010_v14 = vpop.f32.mrb[17].mxu1 }
 0x103   :  { %v691_v15 = vadd.f32 %v2452_v7, %v690_v13  ;;  %v1011_v16 = vadd.f32 %v2452_v7, %v1010_v14 }
 0x104   :  { %1266 = vst [vmem:[#allocation2 + $0x88] sm:$0xff] %v696_v11  ;;  %1330 = vst [vmem:[#allocation2 + $0x288] sm:$0xff] %v1016_v12 }
 0x105   :  { %1265 = vst [vmem:[#allocation2 + $0x80] sm:$0xff] %v691_v15  ;;  %1329 = vst [vmem:[#allocation2 + $0x280] sm:$0xff] %v1011_v16  ;;  %v1695_v17 = vpop.f32.mrb[18].mxu0  ;;  %v1791_v18 = vpop.f32.mrb[18].mxu1 }
 0x106   :  { %v706_v19 = vadd.f32 %v1695_v17, %v2452_v7  ;;  %v1026_v20 = vadd.f32 %v1791_v18, %v2452_v7  ;;  %v700_v21 = vpop.f32.mrb[19].mxu0  ;;  %v1020_v22 = vpop.f32.mrb[19].mxu1 }
 0x107   :  { %v701_v23 = vadd.f32 %v2452_v7, %v700_v21  ;;  %v1021_v24 = vadd.f32 %v2452_v7, %v1020_v22 }
 0x108   :  { %1268 = vst [vmem:[#allocation2 + $0x98] sm:$0xff] %v706_v19  ;;  %1332 = vst [vmem:[#allocation2 + $0x298] sm:$0xff] %v1026_v20 }
 0x109   :  { %1267 = vst [vmem:[#allocation2 + $0x90] sm:$0xff] %v701_v23  ;;  %1331 = vst [vmem:[#allocation2 + $0x290] sm:$0xff] %v1021_v24  ;;  %v1698_v25 = vpop.f32.mrb[20].mxu0  ;;  %v1794_v26 = vpop.f32.mrb[20].mxu1 }
 0x10a   :  { %v716_v27 = vadd.f32 %v1698_v25, %v2452_v7  ;;  %v1036_v28 = vadd.f32 %v1794_v26, %v2452_v7  ;;  %v710_v29 = vpop.f32.mrb[21].mxu0  ;;  %v1030_v30 = vpop.f32.mrb[21].mxu1 }
 0x10b   :  { %v711_v31 = vadd.f32 %v2452_v7, %v710_v29  ;;  %v1031_v32 = vadd.f32 %v2452_v7, %v1030_v30 }
 0x10c   :  { %1270 = vst [vmem:[#allocation2 + $0xa8] sm:$0xff] %v716_v27  ;;  %1334 = vst [vmem:[#allocation2 + $0x2a8] sm:$0xff] %v1036_v28 }
 0x10d   :  { %1269 = vst [vmem:[#allocation2 + $0xa0] sm:$0xff] %v711_v31  ;;  %1333 = vst [vmem:[#allocation2 + $0x2a0] sm:$0xff] %v1031_v32  ;;  %v1701_v33 = vpop.f32.mrb[22].mxu0  ;;  %v1797_v34 = vpop.f32.mrb[22].mxu1 }
 0x10e   :  { %v726_v35 = vadd.f32 %v1701_v33, %v2452_v7  ;;  %v1046_v36 = vadd.f32 %v1797_v34, %v2452_v7  ;;  %v720_v37 = vpop.f32.mrb[23].mxu0  ;;  %v1040_v38 = vpop.f32.mrb[23].mxu1 }
 0x10f   :  { %v721_v39 = vadd.f32 %v2452_v7, %v720_v37  ;;  %v1041_v40 = vadd.f32 %v2452_v7, %v1040_v38 }
 0x110   :  { %1272 = vst [vmem:[#allocation2 + $0xb8] sm:$0xff] %v726_v35  ;;  %1336 = vst [vmem:[#allocation2 + $0x2b8] sm:$0xff] %v1046_v36 }
 0x111   :  { %1271 = vst [vmem:[#allocation2 + $0xb0] sm:$0xff] %v721_v39  ;;  %1335 = vst [vmem:[#allocation2 + $0x2b0] sm:$0xff] %v1041_v40  ;;  %v1704_v41 = vpop.f32.mrb[24].mxu0  ;;  %v1800_v42 = vpop.f32.mrb[24].mxu1 }
 0x112   :  { %v736_v43 = vadd.f32 %v1704_v41, %v2452_v7  ;;  %v1056_v44 = vadd.f32 %v1800_v42, %v2452_v7  ;;  %v730_v45 = vpop.f32.mrb[25].mxu0  ;;  %v1050_v46 = vpop.f32.mrb[25].mxu1 }
 0x113   :  { %v731_v47 = vadd.f32 %v2452_v7, %v730_v45  ;;  %v1051_v48 = vadd.f32 %v2452_v7, %v1050_v46 }
 0x114   :  { %1274 = vst [vmem:[#allocation2 + $0xc8] sm:$0xff] %v736_v43  ;;  %1338 = vst [vmem:[#allocation2 + $0x2c8] sm:$0xff] %v1056_v44 }
 0x115   :  { %1273 = vst [vmem:[#allocation2 + $0xc0] sm:$0xff] %v731_v47  ;;  %1337 = vst [vmem:[#allocation2 + $0x2c0] sm:$0xff] %v1051_v48  ;;  %v1707_v49 = vpop.f32.mrb[26].mxu0  ;;  %v1803_v50 = vpop.f32.mrb[26].mxu1 }
 0x116   :  { %v746_v51 = vadd.f32 %v1707_v49, %v2452_v7  ;;  %v1066_v52 = vadd.f32 %v1803_v50, %v2452_v7  ;;  %v740_v53 = vpop.f32.mrb[27].mxu0  ;;  %v1060_v54 = vpop.f32.mrb[27].mxu1 }
 0x117   :  { %v741_v55 = vadd.f32 %v2452_v7, %v740_v53  ;;  %v1061_v56 = vadd.f32 %v2452_v7, %v1060_v54 }
 0x118   :  { %1276 = vst [vmem:[#allocation2 + $0xd8] sm:$0xff] %v746_v51  ;;  %1340 = vst [vmem:[#allocation2 + $0x2d8] sm:$0xff] %v1066_v52 }
 0x119   :  { %1275 = vst [vmem:[#allocation2 + $0xd0] sm:$0xff] %v741_v55  ;;  %1339 = vst [vmem:[#allocation2 + $0x2d0] sm:$0xff] %v1061_v56  ;;  %v1710_v57 = vpop.f32.mrb[28].mxu0  ;;  %v1806_v58 = vpop.f32.mrb[28].mxu1 }
 0x11a   :  { %v756_v59 = vadd.f32 %v1710_v57, %v2452_v7  ;;  %v1076_v60 = vadd.f32 %v1806_v58, %v2452_v7  ;;  %v750_v61 = vpop.f32.mrb[29].mxu0  ;;  %v1070_v62 = vpop.f32.mrb[29].mxu1 }
 0x11b   :  { %v751_v63 = vadd.f32 %v2452_v7, %v750_v61  ;;  %v1071_v0 = vadd.f32 %v2452_v7, %v1070_v62 }
 0x11c   :  { %1278 = vst [vmem:[#allocation2 + $0xe8] sm:$0xff] %v756_v59  ;;  %1342 = vst [vmem:[#allocation2 + $0x2e8] sm:$0xff] %v1076_v60 }
 0x11d   :  { %1277 = vst [vmem:[#allocation2 + $0xe0] sm:$0xff] %v751_v63  ;;  %1341 = vst [vmem:[#allocation2 + $0x2e0] sm:$0xff] %v1071_v0  ;;  %v1713_v1 = vpop.f32.mrb[30].mxu0  ;;  %v1809_v2 = vpop.f32.mrb[30].mxu1 }
 0x11e   :  { %v766_v3 = vadd.f32 %v1713_v1, %v2452_v7  ;;  %v1086_v4 = vadd.f32 %v1809_v2, %v2452_v7  ;;  %v760_v5 = vpop.f32.mrb[31].mxu0  ;;  %v1080_v6 = vpop.f32.mrb[31].mxu1 }
 0x11f   :  { %v761_v8 = vadd.f32 %v2452_v7, %v760_v5  ;;  %v1081_v9 = vadd.f32 %v2452_v7, %v1080_v6 }
 0x120   :  { %1280 = vst [vmem:[#allocation2 + $0xf8] sm:$0xff] %v766_v3  ;;  %1344 = vst [vmem:[#allocation2 + $0x2f8] sm:$0xff] %v1086_v4 }
 0x121   :  { %1279 = vst [vmem:[#allocation2 + $0xf0] sm:$0xff] %v761_v8  ;;  %1343 = vst [vmem:[#allocation2 + $0x2f0] sm:$0xff] %v1081_v9  ;;  %v1716_v10 = vpop.f32.mrb[32].mxu0  ;;  %v1812_v11 = vpop.f32.mrb[32].mxu1 }
 0x122   :  { %v776_v12 = vadd.f32 %v1716_v10, %v2452_v7  ;;  %v1096_v13 = vadd.f32 %v1812_v11, %v2452_v7  ;;  %v770_v14 = vpop.f32.mrb[33].mxu0  ;;  %v1090_v15 = vpop.f32.mrb[33].mxu1 }
 0x123   :  { %v771_v16 = vadd.f32 %v2452_v7, %v770_v14  ;;  %v1091_v17 = vadd.f32 %v2452_v7, %v1090_v15 }
 0x124   :  { %1282 = vst [vmem:[#allocation2 + $0x108] sm:$0xff] %v776_v12  ;;  %1346 = vst [vmem:[#allocation2 + $0x308] sm:$0xff] %v1096_v13 }
 0x125   :  { %1281 = vst [vmem:[#allocation2 + $0x100] sm:$0xff] %v771_v16  ;;  %1345 = vst [vmem:[#allocation2 + $0x300] sm:$0xff] %v1091_v17  ;;  %v1719_v18 = vpop.f32.mrb[34].mxu0  ;;  %v1815_v19 = vpop.f32.mrb[34].mxu1 }
 0x126   :  { %v786_v20 = vadd.f32 %v1719_v18, %v2452_v7  ;;  %v1106_v21 = vadd.f32 %v1815_v19, %v2452_v7  ;;  %v780_v22 = vpop.f32.mrb[35].mxu0  ;;  %v1100_v23 = vpop.f32.mrb[35].mxu1 }
 0x127   :  { %v781_v24 = vadd.f32 %v2452_v7, %v780_v22  ;;  %v1101_v25 = vadd.f32 %v2452_v7, %v1100_v23 }
 0x128   :  { %1284 = vst [vmem:[#allocation2 + $0x118] sm:$0xff] %v786_v20  ;;  %1348 = vst [vmem:[#allocation2 + $0x318] sm:$0xff] %v1106_v21 }
 0x129   :  { %1283 = vst [vmem:[#allocation2 + $0x110] sm:$0xff] %v781_v24  ;;  %1347 = vst [vmem:[#allocation2 + $0x310] sm:$0xff] %v1101_v25  ;;  %v1722_v26 = vpop.f32.mrb[36].mxu0  ;;  %v1818_v27 = vpop.f32.mrb[36].mxu1 }
 0x12a   :  { %v796_v28 = vadd.f32 %v1722_v26, %v2452_v7  ;;  %v1116_v29 = vadd.f32 %v1818_v27, %v2452_v7  ;;  %v790_v30 = vpop.f32.mrb[37].mxu0  ;;  %v1110_v31 = vpop.f32.mrb[37].mxu1 }
 0x12b   :  { %v791_v32 = vadd.f32 %v2452_v7, %v790_v30  ;;  %v1111_v33 = vadd.f32 %v2452_v7, %v1110_v31 }
 0x12c   :  { %1286 = vst [vmem:[#allocation2 + $0x128] sm:$0xff] %v796_v28  ;;  %1350 = vst [vmem:[#allocation2 + $0x328] sm:$0xff] %v1116_v29 }
 0x12d   :  { %1285 = vst [vmem:[#allocation2 + $0x120] sm:$0xff] %v791_v32  ;;  %1349 = vst [vmem:[#allocation2 + $0x320] sm:$0xff] %v1111_v33  ;;  %v1725_v34 = vpop.f32.mrb[38].mxu0  ;;  %v1821_v35 = vpop.f32.mrb[38].mxu1 }
 0x12e   :  { %v806_v36 = vadd.f32 %v1725_v34, %v2452_v7  ;;  %v1126_v37 = vadd.f32 %v1821_v35, %v2452_v7  ;;  %v800_v38 = vpop.f32.mrb[39].mxu0  ;;  %v1120_v39 = vpop.f32.mrb[39].mxu1 }
 0x12f   :  { %v801_v40 = vadd.f32 %v2452_v7, %v800_v38  ;;  %v1121_v41 = vadd.f32 %v2452_v7, %v1120_v39 }
 0x130   :  { %1288 = vst [vmem:[#allocation2 + $0x138] sm:$0xff] %v806_v36  ;;  %1352 = vst [vmem:[#allocation2 + $0x338] sm:$0xff] %v1126_v37 }
 0x131   :  { %1287 = vst [vmem:[#allocation2 + $0x130] sm:$0xff] %v801_v40  ;;  %1351 = vst [vmem:[#allocation2 + $0x330] sm:$0xff] %v1121_v41  ;;  %v1728_v42 = vpop.f32.mrb[40].mxu0  ;;  %v1824_v43 = vpop.f32.mrb[40].mxu1 }
 0x132   :  { %v816_v44 = vadd.f32 %v1728_v42, %v2452_v7  ;;  %v1136_v45 = vadd.f32 %v1824_v43, %v2452_v7  ;;  %v810_v46 = vpop.f32.mrb[41].mxu0  ;;  %v1130_v47 = vpop.f32.mrb[41].mxu1 }
 0x133   :  { %v811_v48 = vadd.f32 %v2452_v7, %v810_v46  ;;  %v1131_v49 = vadd.f32 %v2452_v7, %v1130_v47 }
 0x134   :  { %1290 = vst [vmem:[#allocation2 + $0x148] sm:$0xff] %v816_v44  ;;  %1354 = vst [vmem:[#allocation2 + $0x348] sm:$0xff] %v1136_v45 }
 0x135   :  { %1289 = vst [vmem:[#allocation2 + $0x140] sm:$0xff] %v811_v48  ;;  %1353 = vst [vmem:[#allocation2 + $0x340] sm:$0xff] %v1131_v49  ;;  %v1731_v50 = vpop.f32.mrb[42].mxu0  ;;  %v1827_v51 = vpop.f32.mrb[42].mxu1 }
 0x136   :  { %v826_v52 = vadd.f32 %v1731_v50, %v2452_v7  ;;  %v1146_v53 = vadd.f32 %v1827_v51, %v2452_v7  ;;  %v820_v54 = vpop.f32.mrb[43].mxu0  ;;  %v1140_v55 = vpop.f32.mrb[43].mxu1 }
 0x137   :  { %v821_v56 = vadd.f32 %v2452_v7, %v820_v54  ;;  %v1141_v57 = vadd.f32 %v2452_v7, %v1140_v55 }
 0x138   :  { %1292 = vst [vmem:[#allocation2 + $0x158] sm:$0xff] %v826_v52  ;;  %1356 = vst [vmem:[#allocation2 + $0x358] sm:$0xff] %v1146_v53 }
 0x139   :  { %1291 = vst [vmem:[#allocation2 + $0x150] sm:$0xff] %v821_v56  ;;  %1355 = vst [vmem:[#allocation2 + $0x350] sm:$0xff] %v1141_v57  ;;  %v1734_v58 = vpop.f32.mrb[44].mxu0  ;;  %v1830_v59 = vpop.f32.mrb[44].mxu1 }
 0x13a   :  { %v836_v60 = vadd.f32 %v1734_v58, %v2452_v7  ;;  %v1156_v61 = vadd.f32 %v1830_v59, %v2452_v7  ;;  %v830_v62 = vpop.f32.mrb[45].mxu0  ;;  %v1150_v63 = vpop.f32.mrb[45].mxu1 }
 0x13b   :  { %v831_v0 = vadd.f32 %v2452_v7, %v830_v62  ;;  %v1151_v1 = vadd.f32 %v2452_v7, %v1150_v63 }
 0x13c   :  { %1294 = vst [vmem:[#allocation2 + $0x168] sm:$0xff] %v836_v60  ;;  %1358 = vst [vmem:[#allocation2 + $0x368] sm:$0xff] %v1156_v61 }
 0x13d   :  { %1293 = vst [vmem:[#allocation2 + $0x160] sm:$0xff] %v831_v0  ;;  %1357 = vst [vmem:[#allocation2 + $0x360] sm:$0xff] %v1151_v1  ;;  %v1737_v2 = vpop.f32.mrb[46].mxu0  ;;  %v1833_v3 = vpop.f32.mrb[46].mxu1 }
 0x13e   :  { %v846_v4 = vadd.f32 %v1737_v2, %v2452_v7  ;;  %v1166_v5 = vadd.f32 %v1833_v3, %v2452_v7  ;;  %v840_v6 = vpop.f32.mrb[47].mxu0  ;;  %v1160_v8 = vpop.f32.mrb[47].mxu1 }
 0x13f   :  { %v841_v9 = vadd.f32 %v2452_v7, %v840_v6  ;;  %v1161_v10 = vadd.f32 %v2452_v7, %v1160_v8 }
 0x140   :  { %1296 = vst [vmem:[#allocation2 + $0x178] sm:$0xff] %v846_v4  ;;  %1360 = vst [vmem:[#allocation2 + $0x378] sm:$0xff] %v1166_v5 }
 0x141   :  { %1295 = vst [vmem:[#allocation2 + $0x170] sm:$0xff] %v841_v9  ;;  %1359 = vst [vmem:[#allocation2 + $0x370] sm:$0xff] %v1161_v10  ;;  %v1740_v11 = vpop.f32.mrb[48].mxu0  ;;  %v1836_v12 = vpop.f32.mrb[48].mxu1 }
 0x142   :  { %v856_v13 = vadd.f32 %v1740_v11, %v2452_v7  ;;  %v1176_v14 = vadd.f32 %v1836_v12, %v2452_v7  ;;  %v850_v15 = vpop.f32.mrb[49].mxu0  ;;  %v1170_v16 = vpop.f32.mrb[49].mxu1 }
 0x143   :  { %v851_v17 = vadd.f32 %v2452_v7, %v850_v15  ;;  %v1171_v18 = vadd.f32 %v2452_v7, %v1170_v16 }
 0x144   :  { %1298 = vst [vmem:[#allocation2 + $0x188] sm:$0xff] %v856_v13  ;;  %1362 = vst [vmem:[#allocation2 + $0x388] sm:$0xff] %v1176_v14 }
 0x145   :  { %1297 = vst [vmem:[#allocation2 + $0x180] sm:$0xff] %v851_v17  ;;  %1361 = vst [vmem:[#allocation2 + $0x380] sm:$0xff] %v1171_v18  ;;  %v1743_v19 = vpop.f32.mrb[50].mxu0  ;;  %v1839_v20 = vpop.f32.mrb[50].mxu1 }
 0x146   :  { %v866_v21 = vadd.f32 %v1743_v19, %v2452_v7  ;;  %v1186_v22 = vadd.f32 %v1839_v20, %v2452_v7  ;;  %v860_v23 = vpop.f32.mrb[51].mxu0  ;;  %v1180_v24 = vpop.f32.mrb[51].mxu1 }
 0x147   :  { %v861_v25 = vadd.f32 %v2452_v7, %v860_v23  ;;  %v1181_v26 = vadd.f32 %v2452_v7, %v1180_v24 }
 0x148   :  { %1300 = vst [vmem:[#allocation2 + $0x198] sm:$0xff] %v866_v21  ;;  %1364 = vst [vmem:[#allocation2 + $0x398] sm:$0xff] %v1186_v22 }
 0x149   :  { %1299 = vst [vmem:[#allocation2 + $0x190] sm:$0xff] %v861_v25  ;;  %1363 = vst [vmem:[#allocation2 + $0x390] sm:$0xff] %v1181_v26  ;;  %v1746_v27 = vpop.f32.mrb[52].mxu0  ;;  %v1842_v28 = vpop.f32.mrb[52].mxu1 }
 0x14a   :  { %v876_v29 = vadd.f32 %v1746_v27, %v2452_v7  ;;  %v1196_v30 = vadd.f32 %v1842_v28, %v2452_v7  ;;  %v870_v31 = vpop.f32.mrb[53].mxu0  ;;  %v1190_v32 = vpop.f32.mrb[53].mxu1 }
 0x14b   :  { %v871_v33 = vadd.f32 %v2452_v7, %v870_v31  ;;  %v1191_v34 = vadd.f32 %v2452_v7, %v1190_v32 }
 0x14c   :  { %1302 = vst [vmem:[#allocation2 + $0x1a8] sm:$0xff] %v876_v29  ;;  %1366 = vst [vmem:[#allocation2 + $0x3a8] sm:$0xff] %v1196_v30 }
 0x14d   :  { %1301 = vst [vmem:[#allocation2 + $0x1a0] sm:$0xff] %v871_v33  ;;  %1365 = vst [vmem:[#allocation2 + $0x3a0] sm:$0xff] %v1191_v34  ;;  %v1749_v35 = vpop.f32.mrb[54].mxu0  ;;  %v1845_v36 = vpop.f32.mrb[54].mxu1 }
 0x14e   :  { %v886_v37 = vadd.f32 %v1749_v35, %v2452_v7  ;;  %v1206_v38 = vadd.f32 %v1845_v36, %v2452_v7  ;;  %v880_v39 = vpop.f32.mrb[55].mxu0  ;;  %v1200_v40 = vpop.f32.mrb[55].mxu1 }
 0x14f   :  { %v881_v41 = vadd.f32 %v2452_v7, %v880_v39  ;;  %v1201_v42 = vadd.f32 %v2452_v7, %v1200_v40 }
 0x150   :  { %1304 = vst [vmem:[#allocation2 + $0x1b8] sm:$0xff] %v886_v37  ;;  %1368 = vst [vmem:[#allocation2 + $0x3b8] sm:$0xff] %v1206_v38 }
 0x151   :  { %1303 = vst [vmem:[#allocation2 + $0x1b0] sm:$0xff] %v881_v41  ;;  %1367 = vst [vmem:[#allocation2 + $0x3b0] sm:$0xff] %v1201_v42  ;;  %v1752_v43 = vpop.f32.mrb[56].mxu0  ;;  %v1848_v44 = vpop.f32.mrb[56].mxu1 }
 0x152   :  { %v896_v45 = vadd.f32 %v1752_v43, %v2452_v7  ;;  %v1216_v46 = vadd.f32 %v1848_v44, %v2452_v7  ;;  %v890_v47 = vpop.f32.mrb[57].mxu0  ;;  %v1210_v48 = vpop.f32.mrb[57].mxu1 }
 0x153   :  { %v891_v49 = vadd.f32 %v2452_v7, %v890_v47  ;;  %v1211_v50 = vadd.f32 %v2452_v7, %v1210_v48 }
 0x154   :  { %1306 = vst [vmem:[#allocation2 + $0x1c8] sm:$0xff] %v896_v45  ;;  %1370 = vst [vmem:[#allocation2 + $0x3c8] sm:$0xff] %v1216_v46 }
 0x155   :  { %1305 = vst [vmem:[#allocation2 + $0x1c0] sm:$0xff] %v891_v49  ;;  %1369 = vst [vmem:[#allocation2 + $0x3c0] sm:$0xff] %v1211_v50  ;;  %v1755_v51 = vpop.f32.mrb[58].mxu0  ;;  %v1851_v52 = vpop.f32.mrb[58].mxu1 }
 0x156   :  { %v906_v53 = vadd.f32 %v1755_v51, %v2452_v7  ;;  %v1226_v54 = vadd.f32 %v1851_v52, %v2452_v7  ;;  %v900_v55 = vpop.f32.mrb[59].mxu0  ;;  %v1220_v56 = vpop.f32.mrb[59].mxu1 }
 0x157   :  { %v901_v57 = vadd.f32 %v2452_v7, %v900_v55  ;;  %v1221_v58 = vadd.f32 %v2452_v7, %v1220_v56 }
 0x158   :  { %1308 = vst [vmem:[#allocation2 + $0x1d8] sm:$0xff] %v906_v53  ;;  %1372 = vst [vmem:[#allocation2 + $0x3d8] sm:$0xff] %v1226_v54 }
 0x159   :  { %1307 = vst [vmem:[#allocation2 + $0x1d0] sm:$0xff] %v901_v57  ;;  %1371 = vst [vmem:[#allocation2 + $0x3d0] sm:$0xff] %v1221_v58  ;;  %v1758_v59 = vpop.f32.mrb[60].mxu0  ;;  %v1854_v60 = vpop.f32.mrb[60].mxu1 }
 0x15a   :  { %v916_v61 = vadd.f32 %v1758_v59, %v2452_v7  ;;  %v1236_v62 = vadd.f32 %v1854_v60, %v2452_v7  ;;  %v910_v63 = vpop.f32.mrb[61].mxu0  ;;  %v1230_v0 = vpop.f32.mrb[61].mxu1 }
 0x15b   :  { %v911_v1 = vadd.f32 %v2452_v7, %v910_v63  ;;  %v1231_v2 = vadd.f32 %v2452_v7, %v1230_v0 }
 0x15c   :  { %1310 = vst [vmem:[#allocation2 + $0x1e8] sm:$0xff] %v916_v61  ;;  %1374 = vst [vmem:[#allocation2 + $0x3e8] sm:$0xff] %v1236_v62 }
 0x15d   :  { %1309 = vst [vmem:[#allocation2 + $0x1e0] sm:$0xff] %v911_v1  ;;  %1373 = vst [vmem:[#allocation2 + $0x3e0] sm:$0xff] %v1231_v2  ;;  %v1761_v3 = vpop.f32.mrb[62].mxu0  ;;  %v1857_v4 = vpop.f32.mrb[62].mxu1 }
 0x15e   :  { %v926_v5 = vadd.f32 %v1761_v3, %v2452_v7  ;;  %v1246_v6 = vadd.f32 %v1857_v4, %v2452_v7  ;;  %v920_v8 = vpop.f32.mrb[63].mxu0  ;;  %v1240_v9 = vpop.f32.mrb[63].mxu1 }
 0x15f   :  { %v921_v10 = vadd.f32 %v2452_v7, %v920_v8  ;;  %v1241_v11 = vadd.f32 %v2452_v7, %v1240_v9 }
 0x160   :  { %1312 = vst [vmem:[#allocation2 + $0x1f8] sm:$0xff] %v926_v5  ;;  %1376 = vst [vmem:[#allocation2 + $0x3f8] sm:$0xff] %v1246_v6 }
 0x161   :  { %1311 = vst [vmem:[#allocation2 + $0x1f0] sm:$0xff] %v921_v10  ;;  %1375 = vst [vmem:[#allocation2 + $0x3f0] sm:$0xff] %v1241_v11 }
 0x162   :  { %1886 = shalt.err (!%p1883_p4)
}
 0x163   :  { %s1887_s4 = scalar_lea.hbm %s2597_s3, 16384 }
 0x164   :  { %p1888_p5 = scmp.ne.s32.totalorder %s2597_s3, %s1887_s4  ;;  %p1891_p6 = scmp.lt.u32.totalorder %s1887_s4, %s2597_s3 }
 0x166   :  { %p1893_p7 = pnand %p1891_p6, %p1888_p5 }
 0x168   :  { %1896 = shalt.err (!%p1893_p7)
}
 0x169   :  { %s1900_s8 = smov 128   ;;  %s1901_s9 = smov 8  }
 0x16a   :  { %1388 = dma.vmem_to_hbm [thread:$0]  %s1383_s2, 16384, %s2597_s3, [#allocation3], %s1900_s8, %s1900_s8, %s1901_s9  }
 0x16b   :  { %1897 = dma.done.wait [#allocation3], 16384  }
 0x16c   :  { %1898 = vsyncadd [#allocation3], 4294950912 }
 0x16d   :  { %1392 = vsyncpa [#allocation3], 1 }

</bundles_post_ra>
